<compile_context>
chip_gen: v5e
topology: v5e:2x2
jax: 0.10.0
libtpu: 0.0.40
codegen_flags: <defaults>
</compile_context>

<pallas_src>
import jax
import jax.numpy as jnp
from jax.experimental import pallas as pl
from jax.experimental.pallas import tpu as pltpu


def _dma_copy_kernel(x_hbm_ref, o_hbm_ref, sem):
    """Single HBM->HBM DMA of the whole tensor in its native shape."""
    cp = pltpu.make_async_copy(x_hbm_ref, o_hbm_ref, sem)
    cp.start()
    cp.wait()


@jax.jit
def _pallas_identity(x: jax.Array) -> jax.Array:
    """Materialized identity copy of one array via a single HBM->HBM DMA."""
    if x.size == 0:          # static under jit; nothing to copy
        return x
    return pl.pallas_call(
        _dma_copy_kernel,
        out_shape=jax.ShapeDtypeStruct(x.shape, x.dtype),
        in_specs=[pl.BlockSpec(memory_space=pl.ANY)],    # raw HBM ref, no auto-DMA
        out_specs=pl.BlockSpec(memory_space=pl.ANY),     # raw HBM ref, no auto-DMA
        scratch_shapes=[pltpu.SemaphoreType.DMA(())],
    )(x)


def inspector_module_forward(*inputs, materialize_copy: bool = False):
    """Mirrors InspectorModule.forward: print(inputs); return inputs.

    By default this is a true pass-through (no device work), matching the
    PyTorch module exactly.  With materialize_copy=True each tensor is routed
    through a single HBM->HBM DMA Pallas kernel and a fresh buffer is
    returned (values bit-identical).
    """
    if materialize_copy:
        # Dispatch all per-tensor DMA kernels first (async) so the print's
        # device->host readback does not serialize against the copies.
        outputs = tuple(_pallas_identity(x) for x in inputs)
    else:
        outputs = inputs
    # Side effect of the PyTorch module: print the input tuple.
    # (Printing full tensors forces a device->host transfer; this matches the
    # PyTorch semantics and only costs host time.)
    print(inputs)
    return outputs


if __name__ == "__main__":
    key = jax.random.PRNGKey(0)
    k0, k1 = jax.random.split(key)

    # Small example inputs (NCHW image-like tensor + a 2-D hidden tensor),
    # consistent with an arbitrary *inputs signature.
    x = jax.random.normal(k0, (2, 4, 16, 16), dtype=jnp.float32)   # NCHW
    y = jax.random.normal(k1, (8, 32), dtype=jnp.float32)          # (seq, hidden)

    # Default path: pure pass-through, zero device work (matches PyTorch).
    outs = inspector_module_forward(x, y)
    assert len(outs) == 2
    assert outs[0] is x and outs[1] is y

    # Optional materialized-copy path: exercises the Pallas HBM->HBM DMA once.
    outs_copy = inspector_module_forward(x, y, materialize_copy=True)
    outs_copy = jax.block_until_ready(outs_copy)

    # Verify exact pass-through semantics (shape, dtype, values).
    assert len(outs_copy) == 2
    assert outs_copy[0].shape == x.shape and outs_copy[0].dtype == x.dtype
    assert outs_copy[1].shape == y.shape and outs_copy[1].dtype == y.dtype
    assert bool(jnp.all(outs_copy[0] == x)) and bool(jnp.all(outs_copy[1] == y))

    print("KERNEL_OK")
</pallas_src>

<mosaic_0001>
module attributes {stable_mosaic.version = 11 : i64} {
  func.func @_dma_copy_kernel(%arg0: memref<2x4x16x16xf32, #tpu.memory_space<any>>, %arg1: memref<2x4x16x16xf32, #tpu.memory_space<any>>, %arg2: memref<!tpu.dma_semaphore, #tpu.memory_space<semaphore_mem>>) attributes {dimension_semantics = [], scalar_prefetch = 0 : i64, scratch_operands = 1 : i64, tpu.core_type = #tpu.core_type<tc>} {
    tpu.enqueue_dma source(%arg0 : memref<2x4x16x16xf32, #tpu.memory_space<any>>) target(%arg1 : memref<2x4x16x16xf32, #tpu.memory_space<any>>) target_semaphore(%arg2 : memref<!tpu.dma_semaphore, #tpu.memory_space<semaphore_mem>>)
    tpu.wait_dma2 semaphore(%arg2 : memref<!tpu.dma_semaphore, #tpu.memory_space<semaphore_mem>>) src(%arg0 : memref<2x4x16x16xf32, #tpu.memory_space<any>>) dst(%arg1 : memref<2x4x16x16xf32, #tpu.memory_space<any>>)
    return
  }
}

</mosaic_0001>

<bundles_post_ra>
// kernel: _pallas_identity.1
= control target key start
LH: loop header
LB: loop body
LE: loop exit
PB: predicated region body
PF: predicated region fallthrough
CT: control target
= control target key end

     0   :  { %s34_s12 = smov [#allocation2]   ;;  %s35_s13 = smov [#allocation3]   ;;  %s53_s0 = inlined_call_operand.hbm [shape: f32[2,4,16,16], index: 0, kind: input, shape index: {}]   ;;  %s54_s1 = inlined_call_operand.hbm [shape: f32[2,4,16,16], index: 1, kind: output, shape index: {}]  }
   0x1   :  { %s10_s8 = sshll.u32 %s53_s0, 4  ;;  %s12_s11 = sshll.u32 %s54_s1, 4  ;;  %s11_s8 = int_to_ptr.hbm [resolvable:$true] %s10_s8  ;;  %s13_s11 = int_to_ptr.hbm [resolvable:$true] %s12_s11 }
   0x2   :  { %s36_s14 = smov 0  }
   0x3   :  { %16 = dma.general %s11_s8, 2048, %s13_s11, %s34_s12, %s35_s13, [#allocation4], %s36_s14, 0  }
   0x4   :  { %32 = dma.done.wait [#allocation2], 2048 }
   0x5   :  { %33 = vsyncadd [#allocation2], 4294965248 }
   0x6   :  { %22 = vsyncmov [#allocation2] }
   0x9   :  { %s23_s15 = vpop.sfrf %22 }
   0xa   :  { %p28_p0 = scmp.ne.s32.totalorder %s23_s15, 0 }
   0xc   :  { %27 = shalt.err (%p28_p0)  }

</bundles_post_ra>
